<compile_context>
chip_gen: v7x
topology: tpu7x:2x2x1
jax: 0.10.0
libtpu: 0.0.40
codegen_flags: <defaults>
</compile_context>

<pallas_src>
import jax
import jax.numpy as jnp
import numpy as np
from jax.experimental import pallas as pl
from jax.experimental.pallas import tpu as pltpu

BN_EPS = 1e-5

# rows of the packed per-channel bias tensor (sublane-aligned offsets)
_ROW_C1, _ROW_B2, _ROW_C3, _ROW_B4 = 0, 8, 16, 24


def _desc_head_kernel(x_ref, w1_ref, w2_ref, w3a_ref, w3b_ref, w4_ref,
                      bias_ref, o_ref):
    """x_ref: (Bt*N, Cpad); o_ref: (Bt, F, N); weights already BN-folded."""
    bt = o_ref.shape[0]
    n = o_ref.shape[2]
    h_dim = w1_ref.shape[1]
    f_dim = w2_ref.shape[1]
    f2_dim = w3a_ref.shape[1]

    c1 = bias_ref[_ROW_C1:_ROW_C1 + 1, :h_dim]      # (1, H)  folded BN + bias
    b2 = bias_ref[_ROW_B2:_ROW_B2 + 1, :f_dim]      # (1, F)
    c3 = bias_ref[_ROW_C3:_ROW_C3 + 1, :f2_dim]     # (1, 2F) folded BN + bias
    b4 = bias_ref[_ROW_B4:_ROW_B4 + 1, :f_dim]      # (1, F)

    x = x_ref[...]                                                  # (Bt*N, Cpad)

    # encoder: Conv1d(Cin->H, k=1) + folded BN + ReLU   (one big matmul)
    h = jnp.dot(x, w1_ref[...], preferred_element_type=jnp.float32) + c1
    h = jnp.maximum(h, 0.0)

    # encoder: Conv1d(H->F, k=1)
    desc = jnp.dot(h.astype(w2_ref.dtype), w2_ref[...],
                   preferred_element_type=jnp.float32) + b2         # (Bt*N, F)

    # encoder2 layer 1, "desc" half of the channel concat (big matmul, bias folded)
    h2_pre = jnp.dot(desc.astype(w3a_ref.dtype), w3a_ref[...],
                     preferred_element_type=jnp.float32) + c3       # (Bt*N, 2F)

    # per batch item: global max pool -> "gloab" half of the concat, ReLU,
    # final Conv1d(2F->F, k=1), and a lane-dense (F, N) store (fused transpose).
    for i in range(bt):
        rows = slice(i * n, (i + 1) * n)
        d_i = desc[rows, :]                                         # (N, F)
        gmax = jnp.max(d_i, axis=0, keepdims=True)                  # (1, F)
        g_i = jnp.dot(gmax.astype(w3b_ref.dtype), w3b_ref[...],
                      preferred_element_type=jnp.float32)           # (1, 2F)
        h2_i = jnp.maximum(h2_pre[rows, :] + g_i, 0.0)              # (N, 2F)
        out_i = jnp.dot(h2_i.astype(w4_ref.dtype), w4_ref[...],
                        preferred_element_type=jnp.float32) + b4    # (N, F)
        o_ref[i] = out_i.T.astype(o_ref.dtype)                      # (F, N)


def _fold_params(params):
    """Fold eval-mode BN (scale s, shift t) and conv biases into the weights."""
    w1, b1, s1, t1, w2, b2, w3a, w3b, b3, s3, t3, w4, b4 = params
    w1f = w1 * s1                    # (Cin, H) * (1, H)
    c1 = b1 * s1 + t1                # (1, H)
    w3af = w3a * s3                  # (F, 2F) * (1, 2F)
    w3bf = w3b * s3
    c3 = b3 * s3 + t3                # (1, 2F)
    return w1f, c1, w2, b2, w3af, w3bf, c3, w4, b4


def _choose_block_batch(B, N, cin_pad, H, F, act_budget_bytes=24 << 20, max_bt=16):
    """Batch items per grid step, budgeted against scoped VMEM (v7x: 64 MiB phys)."""
    # rough f32 working set per item: activations + double-buffered in/out tiles
    per_item = 4 * N * (2 * cin_pad + H + 4 * F + 4 * F)
    bt = max(1, min(B, max_bt, act_budget_bytes // max(per_item, 1)))
    return int(bt)


def descriptor_encoder_forward(kpts, params, *, block_batch=None, dot_dtype=None):
    """kpts: (B, N, 33) float32 -> (B, F, N), matching the PyTorch head (eval-mode BN).

    dot_dtype: optionally jnp.bfloat16 to feed the MXU with bf16 operands
    (recommended on v6e/v7x; keep None/f32 on v5e or when bit-tight accuracy
    is required).
    """
    B, N, Cin = kpts.shape
    w1f, c1, w2, b2, w3af, w3bf, c3, w4, b4 = _fold_params(params)
    H = w1f.shape[1]
    F = w2.shape[1]
    F2 = w3af.shape[1]

    # pad Cin (33) up to a multiple of 64 -> clean K tiling for the first matmul
    cin_pad = -(-Cin // 64) * 64
    w1p = jnp.pad(w1f, ((0, cin_pad - Cin), (0, 0)))

    # pack the four small per-channel bias rows into one tensor (one DMA)
    Lb = max(H, F, F2)
    bias_pack = jnp.zeros((32, Lb), jnp.float32)
    bias_pack = bias_pack.at[_ROW_C1, :H].set(c1[0])
    bias_pack = bias_pack.at[_ROW_B2, :F].set(b2[0])
    bias_pack = bias_pack.at[_ROW_C3, :F2].set(c3[0])
    bias_pack = bias_pack.at[_ROW_B4, :F].set(b4[0])

    bt = block_batch if block_batch is not None else _choose_block_batch(B, N, cin_pad, H, F)
    bt = int(max(1, min(bt, B)))
    n_tiles = -(-B // bt)          # NOTE: on v7x prefer an even n_tiles (2 TCs)
    b_pad = n_tiles * bt

    # TODO(synk): N is assumed to be a multiple of 8 (sublane tile) when more
    # than one batch tile is used; true for the keypoint counts in trans_mdgat.
    x = jnp.pad(kpts, ((0, b_pad - B), (0, 0), (0, cin_pad - Cin)))
    x = x.reshape(b_pad * N, cin_pad)      # free, layout-preserving reshape

    weights = [w1p, w2, w3af, w3bf, w4]
    if dot_dtype is not None:
        x = x.astype(dot_dtype)
        weights = [w.astype(dot_dtype) for w in weights]
    w1p, w2, w3af, w3bf, w4 = weights

    def full_spec(a):
        return pl.BlockSpec(a.shape, lambda b: (0,) * a.ndim)

    out = pl.pallas_call(
        _desc_head_kernel,
        out_shape=jax.ShapeDtypeStruct((b_pad, F, N), jnp.float32),
        grid=(n_tiles,),
        in_specs=[
            pl.BlockSpec((bt * N, cin_pad), lambda b: (b, 0)),
            full_spec(w1p), full_spec(w2), full_spec(w3af), full_spec(w3bf),
            full_spec(w4), full_spec(bias_pack),
        ],
        out_specs=pl.BlockSpec((bt, F, N), lambda b: (b, 0, 0)),
        compiler_params=pltpu.CompilerParams(
            dimension_semantics=("parallel",),
            vmem_limit_bytes=48 * 1024 * 1024),
    )(x, w1p, w2, w3af, w3bf, w4, bias_pack)

    return out[:B]


def init_params(key, feature_dim=32, hidden=64):
    """Deterministic parameter init mirroring the module's shapes.
    encoder  = MLP([33, hidden, feature_dim]); encoder2 = MLP([2F, 2F, F]).
    Last-layer biases are zero (nn.init.constant_(..., 0.0))."""
    F = feature_dim
    ks = jax.random.split(key, 16)

    def conv_w(k, cin, cout):
        lim = 1.0 / np.sqrt(cin)
        return jax.random.uniform(k, (cin, cout), jnp.float32, -lim, lim)

    def conv_b(k, cin, cout):
        lim = 1.0 / np.sqrt(cin)
        return jax.random.uniform(k, (1, cout), jnp.float32, -lim, lim)

    def bn_fold(kg, kb, km, kv, c):
        gamma = 1.0 + 0.05 * jax.random.normal(kg, (1, c), jnp.float32)
        beta = 0.05 * jax.random.normal(kb, (1, c), jnp.float32)
        mean = 0.05 * jax.random.normal(km, (1, c), jnp.float32)
        var = 1.0 + 0.1 * jax.random.uniform(kv, (1, c), jnp.float32)
        scale = gamma / jnp.sqrt(var + BN_EPS)
        shift = beta - mean * scale
        return scale, shift

    # encoder
    w1 = conv_w(ks[0], 33, hidden)
    b1 = conv_b(ks[1], 33, hidden)
    s1, t1 = bn_fold(ks[2], ks[3], ks[4], ks[5], hidden)
    w2 = conv_w(ks[6], hidden, F)
    b2 = jnp.zeros((1, F), jnp.float32)          # constant_(bias, 0.0)

    # encoder2
    w3 = conv_w(ks[7], 2 * F, 2 * F)
    b3 = conv_b(ks[8], 2 * F, 2 * F)
    s3, t3 = bn_fold(ks[9], ks[10], ks[11], ks[12], 2 * F)
    w4 = conv_w(ks[13], 2 * F, F)
    b4 = jnp.zeros((1, F), jnp.float32)          # constant_(bias, 0.0)

    # split W3 by input-channel halves: rows [:F] act on desc, [F:] on gloab
    w3a, w3b = w3[:F, :], w3[F:, :]
    return (w1, b1, s1, t1, w2, b2, w3a, w3b, b3, s3, t3, w4, b4)


def reference_forward(kpts, params):
    """Pure-JAX reference matching the PyTorch forward (eval-mode BN, unfolded)."""
    w1, b1, s1, t1, w2, b2, w3a, w3b, b3, s3, t3, w4, b4 = params
    x = kpts                                                    # (B, N, 33)
    h = jnp.maximum((x @ w1 + b1) * s1 + t1, 0.0)
    desc = h @ w2 + b2                                          # (B, N, F)
    gloab = jnp.max(desc, axis=1, keepdims=True)                # (B, 1, F)
    gloab = jnp.broadcast_to(gloab, desc.shape)
    cat = jnp.concatenate([desc, gloab], axis=-1)               # (B, N, 2F)
    w3 = jnp.concatenate([w3a, w3b], axis=0)
    h2 = jnp.maximum((cat @ w3 + b3) * s3 + t3, 0.0)
    out = h2 @ w4 + b4                                          # (B, N, F)
    return jnp.transpose(out, (0, 2, 1))                        # (B, F, N)


if __name__ == "__main__":
    B, N, C_IN = 2, 16, 33
    FEATURE_DIM, HIDDEN = 32, 64

    key = jax.random.PRNGKey(0)
    k_x, k_p = jax.random.split(key)
    kpts = jax.random.normal(k_x, (B, N, C_IN), jnp.float32)
    params = init_params(k_p, feature_dim=FEATURE_DIM, hidden=HIDDEN)

    out = jax.block_until_ready(descriptor_encoder_forward(kpts, params))
    ref = jax.block_until_ready(reference_forward(kpts, params))
    assert out.shape == (B, FEATURE_DIM, N), out.shape
    # tolerance allows for the f32 reordering introduced by BN/bias folding
    np.testing.assert_allclose(np.asarray(out), np.asarray(ref),
                               rtol=5e-5, atol=1e-5)

    # also exercise batch padding / a multi-tile grid (B not divisible by Bt)
    kpts3 = jax.random.normal(jax.random.PRNGKey(1), (3, N, C_IN), jnp.float32)
    out3 = jax.block_until_ready(
        descriptor_encoder_forward(kpts3, params, block_batch=2))
    ref3 = jax.block_until_ready(reference_forward(kpts3, params))
    np.testing.assert_allclose(np.asarray(out3), np.asarray(ref3),
                               rtol=5e-5, atol=1e-5)

    print("KERNEL_OK")
</pallas_src>

<mosaic_0001>
module attributes {stable_mosaic.version = 11 : i64} {
  func.func @_desc_head_kernel(%arg0: i32, %arg1: memref<32x64xf32, #tpu.memory_space<vmem>>, %arg2: memref<64x64xf32, #tpu.memory_space<vmem>>, %arg3: memref<64x32xf32, #tpu.memory_space<vmem>>, %arg4: memref<32x64xf32, #tpu.memory_space<vmem>>, %arg5: memref<32x64xf32, #tpu.memory_space<vmem>>, %arg6: memref<64x32xf32, #tpu.memory_space<vmem>>, %arg7: memref<32x64xf32, #tpu.memory_space<vmem>>, %arg8: memref<2x32x16xf32, #tpu.memory_space<vmem>>) attributes {dimension_semantics = [#tpu.dimension_semantics<parallel>], iteration_bounds = array<i64: 1>, scalar_prefetch = 0 : i64, scratch_operands = 0 : i64, tpu.core_type = #tpu.core_type<tc>, window_params = [{transform_indices = @transform_0, window_bounds = array<i64: 32, 64>}, {pipeline_mode = #tpu.pipeline_mode<synchronous>, transform_indices = @transform_1, window_bounds = array<i64: 64, 64>}, {pipeline_mode = #tpu.pipeline_mode<synchronous>, transform_indices = @transform_2, window_bounds = array<i64: 64, 32>}, {pipeline_mode = #tpu.pipeline_mode<synchronous>, transform_indices = @transform_3, window_bounds = array<i64: 32, 64>}, {pipeline_mode = #tpu.pipeline_mode<synchronous>, transform_indices = @transform_4, window_bounds = array<i64: 32, 64>}, {pipeline_mode = #tpu.pipeline_mode<synchronous>, transform_indices = @transform_5, window_bounds = array<i64: 64, 32>}, {pipeline_mode = #tpu.pipeline_mode<synchronous>, transform_indices = @transform_6, window_bounds = array<i64: 32, 64>}, {transform_indices = @transform_7, window_bounds = array<i64: 2, 32, 16>}]} {
    %c0 = arith.constant 0 : index
    %c0_0 = arith.constant 0 : index
    %0 = vector.load %arg7[%c0, %c0_0] : memref<32x64xf32, #tpu.memory_space<vmem>>, vector<1x64xf32>
    %c8 = arith.constant 8 : index
    %c0_1 = arith.constant 0 : index
    %1 = vector.load %arg7[%c8, %c0_1] : memref<32x64xf32, #tpu.memory_space<vmem>>, vector<1x32xf32>
    %c16 = arith.constant 16 : index
    %c0_2 = arith.constant 0 : index
    %2 = vector.load %arg7[%c16, %c0_2] : memref<32x64xf32, #tpu.memory_space<vmem>>, vector<1x64xf32>
    %c24 = arith.constant 24 : index
    %c0_3 = arith.constant 0 : index
    %3 = vector.load %arg7[%c24, %c0_3] : memref<32x64xf32, #tpu.memory_space<vmem>>, vector<1x32xf32>
    %c0_4 = arith.constant 0 : index
    %c0_5 = arith.constant 0 : index
    %4 = vector.load %arg1[%c0_4, %c0_5] : memref<32x64xf32, #tpu.memory_space<vmem>>, vector<32x64xf32>
    %c0_6 = arith.constant 0 : index
    %c0_7 = arith.constant 0 : index
    %5 = vector.load %arg2[%c0_6, %c0_7] : memref<64x64xf32, #tpu.memory_space<vmem>>, vector<64x64xf32>
    %cst = arith.constant dense<0.000000e+00> : vector<32x64xf32>
    %6 = tpu.matmul %4, %5, %cst {dimension_numbers = #tpu.dot_dimension_numbers<[1], [0], [0], [1], [0, 0, 1, 1], [], []>} : vector<32x64xf32>, vector<64x64xf32>, vector<32x64xf32> -> vector<32x64xf32>
    %7 = vector.broadcast %0 : vector<1x64xf32> to vector<32x64xf32>
    %8 = arith.addf %6, %7 : vector<32x64xf32>
    %cst_8 = arith.constant 0.000000e+00 : f32
    %9 = vector.broadcast %cst_8 : f32 to vector<32x64xf32>
    %10 = arith.maximumf %8, %9 : vector<32x64xf32>
    %c0_9 = arith.constant 0 : index
    %c0_10 = arith.constant 0 : index
    %11 = vector.load %arg3[%c0_9, %c0_10] : memref<64x32xf32, #tpu.memory_space<vmem>>, vector<64x32xf32>
    %cst_11 = arith.constant dense<0.000000e+00> : vector<32x32xf32>
    %12 = tpu.matmul %10, %11, %cst_11 {dimension_numbers = #tpu.dot_dimension_numbers<[1], [0], [0], [1], [0, 0, 1, 1], [], []>} : vector<32x64xf32>, vector<64x32xf32>, vector<32x32xf32> -> vector<32x32xf32>
    %13 = vector.broadcast %1 : vector<1x32xf32> to vector<32x32xf32>
    %14 = arith.addf %12, %13 : vector<32x32xf32>
    %c0_12 = arith.constant 0 : index
    %c0_13 = arith.constant 0 : index
    %15 = vector.load %arg4[%c0_12, %c0_13] : memref<32x64xf32, #tpu.memory_space<vmem>>, vector<32x64xf32>
    %cst_14 = arith.constant dense<0.000000e+00> : vector<32x64xf32>
    %16 = tpu.matmul %14, %15, %cst_14 {dimension_numbers = #tpu.dot_dimension_numbers<[1], [0], [0], [1], [0, 0, 1, 1], [], []>} : vector<32x32xf32>, vector<32x64xf32>, vector<32x64xf32> -> vector<32x64xf32>
    %17 = vector.broadcast %2 : vector<1x64xf32> to vector<32x64xf32>
    %18 = arith.addf %16, %17 : vector<32x64xf32>
    %19 = vector.extract_strided_slice %14 {offsets = [0, 0], sizes = [16, 32], strides = [1, 1]} : vector<32x32xf32> to vector<16x32xf32>
    %cst_15 = arith.constant dense<0xFF800000> : vector<32xf32>
    %20 = vector.multi_reduction <maximumf>, %19, %cst_15 [0] : vector<16x32xf32> to vector<32xf32>
    %21 = vector.shape_cast %20 : vector<32xf32> to vector<1x32xf32>
    %c0_16 = arith.constant 0 : index
    %c0_17 = arith.constant 0 : index
    %22 = vector.load %arg5[%c0_16, %c0_17] : memref<32x64xf32, #tpu.memory_space<vmem>>, vector<32x64xf32>
    %cst_18 = arith.constant dense<0.000000e+00> : vector<1x64xf32>
    %23 = tpu.matmul %21, %22, %cst_18 {dimension_numbers = #tpu.dot_dimension_numbers<[1], [0], [0], [1], [0, 0, 1, 1], [], []>} : vector<1x32xf32>, vector<32x64xf32>, vector<1x64xf32> -> vector<1x64xf32>
    %24 = vector.extract_strided_slice %18 {offsets = [0, 0], sizes = [16, 64], strides = [1, 1]} : vector<32x64xf32> to vector<16x64xf32>
    %25 = vector.broadcast %23 : vector<1x64xf32> to vector<16x64xf32>
    %26 = arith.addf %24, %25 : vector<16x64xf32>
    %cst_19 = arith.constant 0.000000e+00 : f32
    %27 = vector.broadcast %cst_19 : f32 to vector<16x64xf32>
    %28 = arith.maximumf %26, %27 : vector<16x64xf32>
    %c0_20 = arith.constant 0 : index
    %c0_21 = arith.constant 0 : index
    %29 = vector.load %arg6[%c0_20, %c0_21] : memref<64x32xf32, #tpu.memory_space<vmem>>, vector<64x32xf32>
    %cst_22 = arith.constant dense<0.000000e+00> : vector<16x32xf32>
    %30 = tpu.matmul %28, %29, %cst_22 {dimension_numbers = #tpu.dot_dimension_numbers<[1], [0], [0], [1], [0, 0, 1, 1], [], []>} : vector<16x64xf32>, vector<64x32xf32>, vector<16x32xf32> -> vector<16x32xf32>
    %31 = vector.broadcast %3 : vector<1x32xf32> to vector<16x32xf32>
    %32 = arith.addf %30, %31 : vector<16x32xf32>
    %33 = tpu.transpose %32, [1, 0] : vector<16x32xf32> -> vector<32x16xf32>
    %c0_23 = arith.constant 0 : index
    %c0_24 = arith.constant 0 : index
    %c0_25 = arith.constant 0 : index
    %34 = vector.load %arg8[%c0_23, %c0_24, %c0_25] : memref<2x32x16xf32, #tpu.memory_space<vmem>>, vector<1x32x16xf32>
    %35 = vector.shape_cast %34 : vector<1x32x16xf32> to vector<32x16xf32>
    %36 = vector.shape_cast %33 : vector<32x16xf32> to vector<1x32x16xf32>
    tpu.vector_store %arg8[%c0_23, %c0_24, %c0_25], %36 {strides = array<i32>} : memref<2x32x16xf32, #tpu.memory_space<vmem>>, vector<1x32x16xf32>,
    %37 = vector.extract_strided_slice %14 {offsets = [16, 0], sizes = [16, 32], strides = [1, 1]} : vector<32x32xf32> to vector<16x32xf32>
    %cst_26 = arith.constant dense<0xFF800000> : vector<32xf32>
    %38 = vector.multi_reduction <maximumf>, %37, %cst_26 [0] : vector<16x32xf32> to vector<32xf32>
    %39 = vector.shape_cast %38 : vector<32xf32> to vector<1x32xf32>
    %c0_27 = arith.constant 0 : index
    %c0_28 = arith.constant 0 : index
    %40 = vector.load %arg5[%c0_27, %c0_28] : memref<32x64xf32, #tpu.memory_space<vmem>>, vector<32x64xf32>
    %cst_29 = arith.constant dense<0.000000e+00> : vector<1x64xf32>
    %41 = tpu.matmul %39, %40, %cst_29 {dimension_numbers = #tpu.dot_dimension_numbers<[1], [0], [0], [1], [0, 0, 1, 1], [], []>} : vector<1x32xf32>, vector<32x64xf32>, vector<1x64xf32> -> vector<1x64xf32>
    %42 = vector.extract_strided_slice %18 {offsets = [16, 0], sizes = [16, 64], strides = [1, 1]} : vector<32x64xf32> to vector<16x64xf32>
    %43 = vector.broadcast %41 : vector<1x64xf32> to vector<16x64xf32>
    %44 = arith.addf %42, %43 : vector<16x64xf32>
    %cst_30 = arith.constant 0.000000e+00 : f32
    %45 = vector.broadcast %cst_30 : f32 to vector<16x64xf32>
    %46 = arith.maximumf %44, %45 : vector<16x64xf32>
    %c0_31 = arith.constant 0 : index
    %c0_32 = arith.constant 0 : index
    %47 = vector.load %arg6[%c0_31, %c0_32] : memref<64x32xf32, #tpu.memory_space<vmem>>, vector<64x32xf32>
    %cst_33 = arith.constant dense<0.000000e+00> : vector<16x32xf32>
    %48 = tpu.matmul %46, %47, %cst_33 {dimension_numbers = #tpu.dot_dimension_numbers<[1], [0], [0], [1], [0, 0, 1, 1], [], []>} : vector<16x64xf32>, vector<64x32xf32>, vector<16x32xf32> -> vector<16x32xf32>
    %49 = vector.broadcast %3 : vector<1x32xf32> to vector<16x32xf32>
    %50 = arith.addf %48, %49 : vector<16x32xf32>
    %51 = tpu.transpose %50, [1, 0] : vector<16x32xf32> -> vector<32x16xf32>
    %c1 = arith.constant 1 : index
    %c0_34 = arith.constant 0 : index
    %c0_35 = arith.constant 0 : index
    %52 = vector.load %arg8[%c1, %c0_34, %c0_35] : memref<2x32x16xf32, #tpu.memory_space<vmem>>, vector<1x32x16xf32>
    %53 = vector.shape_cast %52 : vector<1x32x16xf32> to vector<32x16xf32>
    %54 = vector.shape_cast %51 : vector<32x16xf32> to vector<1x32x16xf32>
    tpu.vector_store %arg8[%c1, %c0_34, %c0_35], %54 {strides = array<i32>} : memref<2x32x16xf32, #tpu.memory_space<vmem>>, vector<1x32x16xf32>,
    return
  }
  func.func @transform_0(%arg0: i32) -> (i32, i32) {
    %c0_i32 = arith.constant 0 : i32
    %c0_i32_0 = arith.constant 0 : i32
    return %arg0, %c0_i32 : i32, i32
  }
  func.func @transform_1(%arg0: i32) -> (i32, i32) {
    %c0_i32 = arith.constant 0 : i32
    %c0_i32_0 = arith.constant 0 : i32
    %c0_i32_1 = arith.constant 0 : i32
    return %c0_i32, %c0_i32_0 : i32, i32
  }
  func.func @transform_2(%arg0: i32) -> (i32, i32) {
    %c0_i32 = arith.constant 0 : i32
    %c0_i32_0 = arith.constant 0 : i32
    %c0_i32_1 = arith.constant 0 : i32
    return %c0_i32, %c0_i32_0 : i32, i32
  }
  func.func @transform_3(%arg0: i32) -> (i32, i32) {
    %c0_i32 = arith.constant 0 : i32
    %c0_i32_0 = arith.constant 0 : i32
    %c0_i32_1 = arith.constant 0 : i32
    return %c0_i32, %c0_i32_0 : i32, i32
  }
  func.func @transform_4(%arg0: i32) -> (i32, i32) {
    %c0_i32 = arith.constant 0 : i32
    %c0_i32_0 = arith.constant 0 : i32
    %c0_i32_1 = arith.constant 0 : i32
    return %c0_i32, %c0_i32_0 : i32, i32
  }
  func.func @transform_5(%arg0: i32) -> (i32, i32) {
    %c0_i32 = arith.constant 0 : i32
    %c0_i32_0 = arith.constant 0 : i32
    %c0_i32_1 = arith.constant 0 : i32
    return %c0_i32, %c0_i32_0 : i32, i32
  }
  func.func @transform_6(%arg0: i32) -> (i32, i32) {
    %c0_i32 = arith.constant 0 : i32
    %c0_i32_0 = arith.constant 0 : i32
    %c0_i32_1 = arith.constant 0 : i32
    return %c0_i32, %c0_i32_0 : i32, i32
  }
  func.func @transform_7(%arg0: i32) -> (i32, i32, i32) {
    %c0_i32 = arith.constant 0 : i32
    %c0_i32_0 = arith.constant 0 : i32
    %c0_i32_1 = arith.constant 0 : i32
    return %arg0, %c0_i32, %c0_i32_0 : i32, i32, i32
  }
}

</mosaic_0001>

<bundles_post_ra>
// kernel: tpu_custom_call.1
= control target key start
LH: loop header
LB: loop body
LE: loop exit
PB: predicated region body
PF: predicated region fallthrough
CT: control target
= control target key end

     0   :  { %12 = vsyncpa [#allocation3], 0  ;;  %s1146_s24 = smov [#allocation2]   ;;  %s1368_s0 = inlined_call_operand.vmem [shape: f32[32,64], index: 0, kind: input, shape index: {}]   ;;  %s1369_s1 = inlined_call_operand.vmem [shape: f32[64,64], index: 1, kind: input, shape index: {}]   ;;  %s1370_s2 = inlined_call_operand.vmem [shape: f32[64,32], index: 2, kind: input, shape index: {}]   ;;  %s1371_s3 = inlined_call_operand.vmem [shape: f32[32,64], index: 3, kind: input, shape index: {}]   ;;  %s1372_s4 = inlined_call_operand.vmem [shape: f32[32,64], index: 4, kind: input, shape index: {}]   ;;  %s1373_s5 = inlined_call_operand.vmem [shape: f32[64,32], index: 5, kind: input, shape index: {}]   ;;  %s1374_s6 = inlined_call_operand.hbm [shape: f32[32,64], index: 6, kind: input, shape index: {}]   ;;  %s1375_s7 = inlined_call_operand.vmem [shape: f32[2,32,16], index: 7, kind: output, shape index: {}]  }
   0x1   :  { %s30_s25 = sshll.u32 %s1146_s24, 4  ;;  %s1122_s28 = scalar_lea.hbm %s1374_s6, 512  ;;  %s31_s25 = int_to_ptr.vmem [resolvable:$true] %s30_s25 }
   0x2   :  { %p1123_p0 = scmp.ne.s32.totalorder %s1374_s6, %s1122_s28  ;;  %p1126_p1 = scmp.lt.u32.totalorder %s1122_s28, %s1374_s6 }
   0x4   :  { %p1128_p2 = pnand %p1126_p1, %p1123_p0 }
   0x6   :  { %1131 = shalt.err (!%p1128_p2)
}
   0x7   :  { %s1132_s10 = scalar_lea.vmem %s31_s25, 512  ;;  %p1137_p4 = scmp.lt.s32.totalorder %s31_s25, %s31_s25 }
   0x8   :  { %p1133_p3 = scmp.ne.s32.totalorder %s31_s25, %s1132_s10  ;;  %p1138_p5 = scmp.lt.s32.totalorder %s1132_s10, %s1132_s10 }
   0xa   :  { %p1139_p6 = por %p1138_p5, %p1137_p4 }
   0xc   :  { %p1140_p7 = pnand %p1139_p6, %p1133_p3 }
   0xe   :  { %1143 = shalt.err (!%p1140_p7)
}
   0xf   :  { %s1147_s11 = smov 128   ;;  %s1148_s12 = smov 8  }
  0x10   :  { %36 = dma.hbm_to_vmem [thread:$0]  %s1374_s6, 512, %s31_s25, [#allocation3], %s1147_s11, %s1147_s11, %s1148_s12  }
  0x11   :  { %1144 = dma.done.wait [#allocation3], 512  }
  0x12   :  { %1145 = vsyncadd [#allocation3], 4294966784  ;;  %v48_v0 = vld [vmem:[%s1369_s1] sm:$0xff]  ;;  %v49_v1 = vld [vmem:[%s1369_s1 + $0x8] sm:$0xff]  ;;  %vm60_vm0 = vcmask 523264   ;;  %v1149_v50 = vmov 0.0|0.0  }
  0x13   :  { %v50_v2 = vld [vmem:[%s1369_s1 + $0x10] sm:$0xff]  ;;  %v1032_v3 = vpack.c.bf16 %v49_v1, %v48_v0  ;;  %v51_v4 = vld [vmem:[%s1369_s1 + $0x18] sm:$0xff]  ;;  %v52_v6 = vld [vmem:[%s1369_s1 + $0x20] sm:$0xff]  ;;  %vm1150_vm1 = vmmov 0   ;;  %v1151_v54 = vmov 0.0   ;;  %vm279_vm2 = vcmask 261120  }
  0x14   :  { %v1036_v5 = vpack.c.bf16 %v51_v4, %v50_v2  ;;  %v53_v7 = vld [vmem:[%s1369_s1 + $0x28] sm:$0xff]  ;;  %v44_v8 = vld [vmem:[%s1368_s0] sm:$0xff]  ;;  %v164_v11 = vld [vmem:[%s1370_s2 + $0x10] sm:$0xff]  ;;  %vm596_vm3 = vcmask 130048  }
  0x15   :  { %1033 = vmatprep.subr.bf16.mxu0 %v1032_v3  ;;  %930 = vmatprep.mubr.msk.f32.mxu0 %vm60_vm0, %v44_v8  ;;  %v162_v9 = vld [vmem:[%s1370_s2] sm:$0xff]  ;;  %v163_v10 = vld [vmem:[%s1370_s2 + $0x8] sm:$0xff]  ;;  %v1040_v12 = vpack.c.bf16 %v53_v7, %v52_v6  ;;  %v54_v13 = vld [vmem:[%s1369_s1 + $0x30] sm:$0xff] }
  0x16   :  { %1035 = vmatpush3.bf16.msra.mxu0 %v1032_v3  ;;  %v1048_v14 = vpack.c.bf16 %v163_v10, %v162_v9  ;;  %v165_v15 = vld [vmem:[%s1370_s2 + $0x18] sm:$0xff]  ;;  %v166_v18 = vld [vmem:[%s1370_s2 + $0x20] sm:$0xff]  ;;  %v167_v19 = vld [vmem:[%s1370_s2 + $0x28] sm:$0xff] }
  0x17   :  { %1037 = vmatprep.subr.bf16.mxu0 %v1036_v5  ;;  %v55_v16 = vld [vmem:[%s1369_s1 + $0x38] sm:$0xff]  ;;  %v1052_v17 = vpack.c.bf16 %v165_v15, %v164_v11  ;;  %v1056_v21 = vpack.c.bf16 %v167_v19, %v166_v18  ;;  %v45_v22 = vld [vmem:[%s1368_s0 + $0x8] sm:$0xff]  ;;  %v46_v23 = vld [vmem:[%s1368_s0 + $0x10] sm:$0xff] }
  0x18   :  { %1049 = vmatprep.subr.bf16.mxu1 %v1048_v14  ;;  %v1044_v20 = vpack.c.bf16 %v55_v16, %v54_v13  ;;  %v47_v24 = vld [vmem:[%s1368_s0 + $0x18] sm:$0xff]  ;;  %v168_v25 = vld [vmem:[%s1370_s2 + $0x30] sm:$0xff]  ;;  %v271_v28 = vld [vmem:[%s1371_s3] sm:$0xff] }
  0x19   :  { %1051 = vmatpush3.bf16.msra.mxu1 %v1048_v14  ;;  %v169_v26 = vld [vmem:[%s1370_s2 + $0x38] sm:$0xff]  ;;  %v272_v29 = vld [vmem:[%s1371_s3 + $0x8] sm:$0xff]  ;;  %v826_v31 = vld [vmem:[#allocation2] ss:$0 sm:$0xff] }
  0x1a   :  { %1039 = vmatpush3.bf16.msra.mxu0 %v1036_v5  ;;  %1053 = vmatprep.subr.bf16.mxu1 %v1052_v17  ;;  %v1060_v27 = vpack.c.bf16 %v169_v26, %v168_v25  ;;  %v1064_v30 = vpack.c.bf16 %v272_v29, %v271_v28  ;;  %v273_v44 = vld [vmem:[%s1371_s3 + $0x10] sm:$0xff]  ;;  %v274_v45 = vld [vmem:[%s1371_s3 + $0x18] sm:$0xff]  ;;  %v386_v47 = vld [vmem:[%s1372_s4] sm:$0xff] }
  0x1b   :  { %1041 = vmatprep.subr.bf16.mxu0 %v1040_v12  ;;  %v1068_v46 = vpack.c.bf16 %v274_v45, %v273_v44  ;;  %v387_v48 = vld [vmem:[%s1372_s4 + $0x8] sm:$0xff]  ;;  %v388_v51 = vld [vmem:[%s1372_s4 + $0x10] sm:$0xff]  ;;  %v389_v52 = vld [vmem:[%s1372_s4 + $0x18] sm:$0xff] }
  0x1c   :  { %v1073_v49 = vpack.c.bf16 %v387_v48, %v386_v47  ;;  %v1076_v53 = vpack.c.bf16 %v389_v52, %v388_v51  ;;  %v831_v55 = vld [vmem:[#allocation2 + $0x8] ss:$0 sm:$0xff]  ;;  %v471_v18 = vld [vmem:[%s1373_s5] sm:$0xff]  ;;  %v478_v28 = vld [vmem:[%s1373_s5 + $0x38] sm:$0xff] }
  0x1d   :  { %1055 = vmatpush3.bf16.msra.mxu1 %v1052_v17  ;;  %v472_v19 = vld [vmem:[%s1373_s5 + $0x8] sm:$0xff] }
  0x1e   :  { %1043 = vmatpush3.bf16.msra.mxu0 %v1040_v12  ;;  %1057 = vmatprep.subr.bf16.mxu1 %v1056_v21  ;;  %v476_v25 = vld [vmem:[%s1373_s5 + $0x28] sm:$0xff] }
  0x1f   :  { %1045 = vmatprep.subr.bf16.mxu0 %v1044_v20 }
  0x21   :  { %1059 = vmatpush3.bf16.msra.mxu1 %v1056_v21  ;;  %v473_v21 = vld [vmem:[%s1373_s5 + $0x10] sm:$0xff] }
  0x22   :  { %1047 = vmatpush3.bf16.msra.mxu0 %v1044_v20  ;;  %1061 = vmatprep.subr.bf16.mxu1 %v1060_v27  ;;  %v1078_v20 = vpack.c.bf16 %v472_v19, %v471_v18 }
  0x23   :  { %1065 = vmatprep.subr.bf16.mxu0 %v1064_v30 }
  0x25   :  { %931 = vmatmul.mubr.msk.f32.vlgmr.msra.gmra.mrb[0].mxu0 %vm60_vm0, %v45_v22  ;;  %1063 = vmatpush3.bf16.msra.mxu1 %v1060_v27  ;;  %v474_v22 = vld [vmem:[%s1373_s5 + $0x18] sm:$0xff]  ;;  %v477_v27 = vld [vmem:[%s1373_s5 + $0x30] sm:$0xff] }
  0x26   :  { %933 = vmatprep.mubr.msk.f32.mxu0 %vm60_vm0, %v46_v23  ;;  %1067 = vmatpush3.bf16.msra.mxu0 %v1064_v30  ;;  %v1082_v23 = vpack.c.bf16 %v474_v22, %v473_v21  ;;  %v1090_v29 = vpack.c.bf16 %v478_v28, %v477_v27 }
  0x27   :  { %1069 = vmatprep.subr.bf16.mxu0 %v1068_v46  ;;  %1072 = vmatprep.subr.bf16.mxu1 %v1149_v50 }
  0x29   :  { %934 = vmatmul.mubr.msk.f32.gmra.mrb[2].mxu0 %vm60_vm0, %v47_v24  ;;  %v475_v24 = vld [vmem:[%s1373_s5 + $0x20] sm:$0xff] }
  0x2a   :  { %1071 = vmatpush3.bf16.msra.mxu0 %v1068_v46  ;;  %v1086_v26 = vpack.c.bf16 %v476_v25, %v475_v24 }
  0x2b   :  { %1079 = vmatprep.subr.bf16.mxu0 %v1078_v20 }
  0xf8   :  { %v932_v32 = vpop.f32.mrb[0].mxu0 }
  0xf9   :  { %v145_v33 = vadd.f32 %v932_v32, %v826_v31  ;;  %v139_v34 = vpop.f32.mrb[1].mxu0  ;;  %v463_v32 = vlaneseq }
  0xfa   :  { %v140_v35 = vadd.f32 %v826_v31, %v139_v34 }
  0xfb   :  { %v159_v38 = vmax.f32 %v145_v33, 0.0 }
  0xfc   :  { %v158_v36 = vmax.f32 %v140_v35, 0.0  ;;  %v935_v37 = vpop.f32.mrb[2].mxu0  ;;  %v464_v35 = vshrl.u32 %v463_v32, 7 }
  0xfd   :  { %v155_v39 = vadd.f32 %v935_v37, %v826_v31  ;;  %v149_v40 = vpop.f32.mrb[3].mxu0  ;;  %v836_v37 = vld [vmem:[#allocation2 + $0x10] ss:$0 sm:$0xff] }
  0xfe   :  { %v150_v41 = vadd.f32 %v826_v31, %v149_v40  ;;  %952 = vmatprep.mubr.msk.f32.mxu1 %vm60_vm0, %v158_v36  ;;  %v465_v36 = vsub.s32 0, %v464_v35 }
  0xff   :  { %v161_v42 = vmax.f32 %v155_v39, 0.0  ;;  %953 = vmatmul.mubr.msk.f32.vlgmr.msra.gmra.mrb[0].mxu1 %vm60_vm0, %v159_v38 }
 0x100   :  { %v160_v43 = vmax.f32 %v150_v41, 0.0  ;;  %1074 = vmatpush3.bf16.msra.mxu1 %v1073_v49 }
 0x101   :  { %1075 = vmatprep.subr.bf16.mxu1 %v1149_v50 }
 0x102   :  { %955 = vmatprep.mubr.msk.f32.mxu1 %vm60_vm0, %v160_v43 }
 0x103   :  { %956 = vmatmul.mubr.msk.f32.gmra.mrb[2].mxu1 %vm60_vm0, %v161_v42 }
 0x104   :  { %1077 = vmatpush3.bf16.msra.mxu1 %v1076_v53  ;;  %980 = vmatprep.mubr.msk.f32.mxu1 %vm1150_vm1, %v1151_v54 }
 0x105   :  { %1094 = vmatprep.subr.bf16.mxu1 %v1149_v50 }
 0x1d2   :  { %v954_v56 = vpop.f32.mrb[0].mxu1 }
 0x1d3   :  { %v258_v57 = vadd.f32 %v954_v56, %v831_v55  ;;  %v252_v58 = vpop.f32.mrb[1].mxu1  ;;  %v842_v56 = vld [vmem:[#allocation2 + $0x18] ss:$0 sm:$0xff] }
 0x1d4   :  { %v253_v59 = vadd.f32 %v831_v55, %v252_v58 }
 0x1d5   :  { %v378_v60 = vsel %vm279_vm2, %v258_v57, -inf }
 0x1d6   :  { %v377_v61 = vsel %vm279_vm2, %v253_v59, -inf  ;;  %v957_v62 = vpop.f32.mrb[2].mxu1  ;;  %966 = vmatprep.mubr.msk.f32.mxu0 %vm279_vm2, %v253_v59 }
 0x1d7   :  { %v379_v63 = vmax.f32 %v377_v61, %v378_v60  ;;  %v268_v0 = vadd.f32 %v957_v62, %v831_v55  ;;  %v262_v1 = vpop.f32.mrb[3].mxu1  ;;  %967 = vmatmul.mubr.msk.f32.vlgmr.msra.gmra.mrb[4].mxu0 %vm279_vm2, %v258_v57 }
 0x1d8   :  { %v263_v2 = vadd.f32 %v831_v55, %v262_v1  ;;  %1081 = vmatpush3.bf16.msra.mxu0 %v1078_v20 }
 0x1d9   :  { %v380_v3 = vrot.slane %v379_v63, 4  ;;  %v602_v4 = vsel %vm279_vm2, %v268_v0, -inf  ;;  %1083 = vmatprep.subr.bf16.mxu0 %v1082_v23 }
 0x1da   :  { %v601_v5 = vsel %vm279_vm2, %v263_v2, -inf  ;;  %969 = vmatprep.mubr.msk.f32.mxu0 %vm279_vm2, %v263_v2 }
 0x1db   :  { %v381_v6 = vmax.f32 %v379_v63, %v380_v3  ;;  %v603_v7 = vmax.f32 %v601_v5, %v602_v4  ;;  %970 = vmatmul.mubr.msk.f32.gmra.mrb[6].mxu0 %vm279_vm2, %v268_v0 }
 0x1dc   :  { %1085 = vmatpush3.bf16.msra.mxu0 %v1082_v23 }
 0x1dd   :  { %v382_v8 = vrot.slane %v381_v6, 2  ;;  %v604_v9 = vrot.slane %v603_v7, 4  ;;  %1087 = vmatprep.subr.bf16.mxu0 %v1086_v26 }
 0x1df   :  { %v383_v10 = vmax.f32 %v381_v6, %v382_v8  ;;  %v605_v11 = vmax.f32 %v603_v7, %v604_v9 }
 0x1e0   :  { %1089 = vmatpush3.bf16.msra.mxu0 %v1086_v26 }
 0x1e1   :  { %v384_v12 = vrot.slane %v383_v10, 1  ;;  %v606_v13 = vrot.slane %v605_v11, 2  ;;  %1091 = vmatprep.subr.bf16.mxu0 %v1090_v29 }
 0x1e3   :  { %v385_v14 = vmax.f32 %v383_v10, %v384_v12  ;;  %v607_v15 = vmax.f32 %v605_v11, %v606_v13 }
 0x1e4   :  { %1093 = vmatpush3.bf16.msra.mxu0 %v1090_v29 }
 0x1e5   :  { %981 = vmatmul.mubr.msk.f32.vlgmr.msra.gmra.mrb[4].mxu1 %vm279_vm2, %v385_v14  ;;  %v608_v16 = vrot.slane %v607_v15, 1 }
 0x1e6   :  { %1096 = vmatpush3.bf16.msra.mxu1 %v1073_v49  ;;  %1010 = vmatprep.mubr.msk.f32.mxu1 %vm1150_vm1, %v1151_v54 }
 0x1e7   :  { %1097 = vmatprep.subr.bf16.mxu1 %v1149_v50  ;;  %v609_v17 = vmax.f32 %v607_v15, %v608_v16 }
 0x1ea   :  { %1099 = vmatpush3.bf16.msra.mxu1 %v1076_v53 }
 0x1eb   :  { %1101 = vmatprep.subr.bf16.mxu1 %v1078_v20 }
 0x1ed   :  { %1011 = vmatmul.mubr.msk.f32.vlgmr.msra.gmra.mrb[6].mxu1 %vm279_vm2, %v609_v17 }
 0x1ee   :  { %1103 = vmatpush3.bf16.msra.mxu1 %v1078_v20 }
 0x1ef   :  { %1105 = vmatprep.subr.bf16.mxu1 %v1082_v23 }
 0x1f2   :  { %1107 = vmatpush3.bf16.msra.mxu1 %v1082_v23 }
 0x1f3   :  { %1109 = vmatprep.subr.bf16.mxu1 %v1086_v26 }
 0x1f6   :  { %1111 = vmatpush3.bf16.msra.mxu1 %v1086_v26 }
 0x1f7   :  { %1113 = vmatprep.subr.bf16.mxu1 %v1090_v29 }
 0x1fa   :  { %1115 = vmatpush3.bf16.msra.mxu1 %v1090_v29 }
 0x2aa   :  { %v968_v30 = vpop.f32.mrb[4].mxu0 }
 0x2ab   :  { %v358_v31 = vpop.f32.mrb[5].mxu0  ;;  %v364_v39 = vadd.f32 %v968_v30, %v836_v37 }
 0x2ac   :  { %v359_v40 = vadd.f32 %v836_v37, %v358_v31 }
 0x2ae   :  { %v971_v33 = vpop.f32.mrb[6].mxu0 }
 0x2af   :  { %v368_v34 = vpop.f32.mrb[7].mxu0  ;;  %v374_v48 = vadd.f32 %v971_v33, %v836_v37 }
 0x2b0   :  { %v369_v49 = vadd.f32 %v836_v37, %v368_v34 }
 0x2b8   :  { %v459_v38 = vpop.f32.mrb[4].mxu1 }
 0x2b9   :  { %v466_v41 = vrot.slane %v459_v38, %v465_v36  ;;  %v982_v42 = vpop.f32.mrb[5].mxu1 }
 0x2bb   :  { %v467_v43 = vadd.f32 %v466_v41, %v359_v40  ;;  %v468_v44 = vadd.f32 %v466_v41, %v364_v39 }
 0x2bd   :  { %v469_v45 = vmax.f32 %v467_v43, 0.0  ;;  %v470_v46 = vmax.f32 %v468_v44, 0.0 }
 0x2bf   :  { %999 = vmatprep.mubr.msk.f32.mxu0 %vm60_vm0, %v469_v45 }
 0x2c0   :  { %v683_v47 = vpop.f32.mrb[6].mxu1  ;;  %1000 = vmatmul.mubr.msk.f32.vlgmr.msra.gmra.mrb[8].mxu0 %vm60_vm0, %v470_v46 }
 0x2c1   :  { %v690_v50 = vrot.slane %v683_v47, %v465_v36  ;;  %v1012_v51 = vpop.f32.mrb[7].mxu1 }
 0x2c3   :  { %v691_v52 = vadd.f32 %v690_v50, %v369_v49  ;;  %v692_v53 = vadd.f32 %v690_v50, %v374_v48 }
 0x2c5   :  { %v693_v54 = vmax.f32 %v691_v52, 0.0  ;;  %v694_v55 = vmax.f32 %v692_v53, 0.0 }
 0x2c7   :  { %1029 = vmatprep.mubr.msk.f32.mxu1 %vm60_vm0, %v693_v54 }
 0x2c8   :  { %1030 = vmatmul.mubr.msk.f32.vlgmr.msra.gmra.mrb[8].mxu1 %vm60_vm0, %v694_v55 }
 0x393   :  { %v1001_v57 = vpop.f32.mrb[8].mxu0 }
 0x394   :  { %v555_v58 = vpop.f32.mrb[9].mxu0  ;;  %v561_v60 = vadd.f32 %v1001_v57, %v842_v56 }
 0x395   :  { %v556_v59 = vadd.f32 %v842_v56, %v555_v58 }
 0x397   :  { %564 = vxpose.xlu0.b32.start [1/2] (short) (narrow) %v556_v59, 32 }
 0x39b   :  { %v1031_v61 = vpop.f32.mrb[8].mxu1  ;;  %565 = vxpose.xlu0.b32.end [2/2] (short) (narrow) %v561_v60, 32 }
 0x39c   :  { %v775_v62 = vpop.f32.mrb[9].mxu1  ;;  %v781_v0 = vadd.f32 %v1031_v61, %v842_v56 }
 0x39d   :  { %v776_v63 = vadd.f32 %v842_v56, %v775_v62 }
 0x39f   :  { %784 = vxpose.xlu1.b32.start [1/2] (short) (narrow) %v776_v63, 32 }
 0x3a3   :  { %785 = vxpose.xlu1.b32.end [2/2] (short) (narrow) %v781_v0, 32 }
 0x417   :  { %v580_v1 = vpop.trf.xlu0 }
 0x418   :  { %597 = vst.msk [vmem:[%s1375_s7] sm:$0xff] %vm596_vm3, %v580_v1 }
 0x41b   :  { %v581_v2 = vpop.trf.xlu0 }
 0x41c   :  { %598 = vst.msk [vmem:[%s1375_s7 + $0x8] sm:$0xff] %vm596_vm3, %v581_v2 }
 0x41f   :  { %v800_v3 = vpop.trf.xlu1  ;;  %v582_v4 = vpop.trf.xlu0 }
 0x420   :  { %848 = vst.msk [vmem:[%s1375_s7 + $0x20] sm:$0xff] %vm596_vm3, %v800_v3  ;;  %599 = vst.msk [vmem:[%s1375_s7 + $0x10] sm:$0xff] %vm596_vm3, %v582_v4 }
 0x423   :  { %v801_v5 = vpop.trf.xlu1  ;;  %v583_v6 = vpop.trf.xlu0 }
 0x424   :  { %849 = vst.msk [vmem:[%s1375_s7 + $0x28] sm:$0xff] %vm596_vm3, %v801_v5  ;;  %600 = vst.msk [vmem:[%s1375_s7 + $0x18] sm:$0xff] %vm596_vm3, %v583_v6 }
 0x427   :  { %v802_v7 = vpop.trf.xlu1 }
 0x428   :  { %850 = vst.msk [vmem:[%s1375_s7 + $0x30] sm:$0xff] %vm596_vm3, %v802_v7 }
 0x42b   :  { %v803_v8 = vpop.trf.xlu1 }
 0x42c   :  { %851 = vst.msk [vmem:[%s1375_s7 + $0x38] sm:$0xff] %vm596_vm3, %v803_v8 }
 0x42d   :  { %825 = vsyncpa [#allocation3], 1 }

</bundles_post_ra>
